<compile_context>
chip_gen: v5e
topology: v5e:2x2
jax: 0.10.0
libtpu: 0.0.40
codegen_flags: <defaults>
</compile_context>

<pallas_src>
import jax
import jax.numpy as jnp
from jax.experimental import pallas as pl
from jax.experimental.pallas import tpu as pltpu

_LANE = 128
_PALLAS_MIN_ELEMENTS = 1 << 16   # below this, fused XLA beats pallas_call overhead
_MAX_BLOCK_BYTES = 4 << 20       # diminishing returns beyond ~4 MiB / block
_NUM_STREAMS = 5                 # 3 inputs + 2 outputs


def _sublane_multiple(dtype) -> int:
    # (8,128) tiling for 4-byte dtypes; packed dtypes need 16 / 32 sublanes.
    itemsize = jnp.dtype(dtype).itemsize
    return max(8, 32 // max(itemsize, 1))


def _round_up(x: int, m: int) -> int:
    return ((x + m - 1) // m) * m


def _round_down(x: int, m: int) -> int:
    return (x // m) * m


def _vmem_budget_bytes():
    """(usable budget, physical capacity) for the current TPU generation."""
    try:
        cap = int(pltpu.get_tpu_info().vmem_capacity_bytes)
    except Exception:
        cap = 64 << 20  # conservative: v7x per-TC physical VMEM
    budget = min((cap * 2) // 3, 48 << 20)
    return budget, cap


def _lane_dense_view(shape, n):
    """A copy-free (row-major) 2-D view (rows, cols) with cols % 128 == 0,
    or None if no such view exists without padding."""
    if len(shape) >= 2 and shape[-1] % _LANE == 0:
        cols = shape[-1]
        return n // cols, cols
    if n % _LANE == 0:
        cols = _LANE
        while cols * 2 <= 8192 and n % (cols * 2) == 0:
            cols *= 2
        return n // cols, cols
    return None


def _grad_mod_2_kernel(total_ref, pad_vis_ref, pad_aud_ref, m_a_ref, m_v_ref):
    # Pure elementwise (VPU) streaming op; read each input tile once,
    # produce both outputs.  Factored form: 5 VALU ops / element.
    h = 0.5 * total_ref[...]
    hd = 0.5 * (pad_vis_ref[...] - pad_aud_ref[...])
    m_a_ref[...] = (h + hd).astype(m_a_ref.dtype)   # 0.5*(t - a + v)
    m_v_ref[...] = (h - hd).astype(m_v_ref.dtype)   # 0.5*(t - v + a)


def _combine_ref(total_out, pad_visual_out, pad_audio_out):
    """Pure-JAX reference (what XLA fuses for free)."""
    m_a = 0.5 * (total_out - pad_audio_out + pad_visual_out)
    m_v = 0.5 * (total_out - pad_visual_out + pad_audio_out)
    return m_a, m_v


def _launch(t2, v2, a2, rows, cols, block_rows, vmem_limit, n, itemsize, dtype):
    grid = (pl.cdiv(rows, block_rows),)
    spec = pl.BlockSpec((block_rows, cols), lambda i: (i, 0))
    cost = pl.CostEstimate(flops=5 * n, transcendentals=0,
                           bytes_accessed=_NUM_STREAMS * n * itemsize)
    return pl.pallas_call(
        _grad_mod_2_kernel,
        out_shape=(
            jax.ShapeDtypeStruct((rows, cols), dtype),
            jax.ShapeDtypeStruct((rows, cols), dtype),
        ),
        grid=grid,
        in_specs=[spec, spec, spec],
        out_specs=(spec, spec),
        compiler_params=pltpu.CompilerParams(
            dimension_semantics=("parallel",),
            vmem_limit_bytes=int(vmem_limit),
        ),
        cost_estimate=cost,
    )(t2, v2, a2)


def _combine_pallas(total_out, pad_visual_out, pad_audio_out, *, block_rows=None):
    """Copy-free tiled Pallas path (free reshapes only, no pad / slice)."""
    shape = total_out.shape
    dtype = total_out.dtype
    itemsize = jnp.dtype(dtype).itemsize
    n = int(total_out.size)
    if n == 0:
        return _combine_ref(total_out, pad_visual_out, pad_audio_out)

    budget, cap = _vmem_budget_bytes()
    block_bytes_target = min(_MAX_BLOCK_BYTES, max(budget // (2 * _NUM_STREAMS), 1))

    view = _lane_dense_view(shape, n)
    if view is None:
        # No copy-free lane-dense view.  Padding would more than double HBM
        # traffic, so: tiny/odd arrays get a single full-array block (valid via
        # the "equal full dims" rule); big odd arrays fall back to fused XLA.
        if len(shape) == 1:
            rows, cols = 1, shape[0]
        else:
            rows, cols = n // shape[-1], shape[-1]
        if 2 * _NUM_STREAMS * n * itemsize > budget:
            return _combine_ref(total_out, pad_visual_out, pad_audio_out)
        t2 = total_out.reshape(rows, cols)
        v2 = pad_visual_out.reshape(rows, cols)
        a2 = pad_audio_out.reshape(rows, cols)
        m_a, m_v = _launch(t2, v2, a2, rows, cols, rows, budget, n, itemsize, dtype)
        return m_a.reshape(shape), m_v.reshape(shape)

    rows, cols = view
    sub = _sublane_multiple(dtype)
    row_bytes = cols * itemsize

    # Rows per block: as large as the per-block budget allows, multiple of
    # the sublane tile.
    tr = max(sub, _round_down(max(block_bytes_target // row_bytes, 1), sub))
    if block_rows is not None:
        tr = max(sub, _round_down(int(block_rows), sub))
    if tr >= rows:
        tr = rows  # full-dim escape (valid even if rows % sub != 0)
    # Guarantee >= 2 grid steps when possible so ("parallel",) can shard the
    # grid across v7x's two TensorCores (harmless no-op on v5e/v6e).
    if rows >= 2 * sub:
        tr = min(tr, _round_up(pl.cdiv(rows, 2), sub))

    needed = 2 * _NUM_STREAMS * tr * row_bytes  # 5 streams, double-buffered
    vmem_limit = min(max(budget, needed + (4 << 20)), max(cap - (8 << 20), budget))

    t2 = total_out.reshape(rows, cols)
    v2 = pad_visual_out.reshape(rows, cols)
    a2 = pad_audio_out.reshape(rows, cols)
    m_a, m_v = _launch(t2, v2, a2, rows, cols, tr, vmem_limit, n, itemsize, dtype)
    return m_a.reshape(shape), m_v.reshape(shape)


def grad_mod_2_modality_outputs(total_out, pad_visual_out, pad_audio_out,
                                *, force_pallas: bool = False, block_rows=None):
    """Returns (m_a, m_v) as in GradMod_2.forward's modality mixing step."""
    assert total_out.shape == pad_visual_out.shape == pad_audio_out.shape
    assert total_out.dtype == pad_visual_out.dtype == pad_audio_out.dtype

    # Non-float dtypes (not a real logits case): keep exact XLA semantics.
    if not jnp.issubdtype(total_out.dtype, jnp.floating):
        return _combine_ref(total_out, pad_visual_out, pad_audio_out)

    if not force_pallas and total_out.size < _PALLAS_MIN_ELEMENTS:
        # Tiny logits tensor: fused XLA is strictly faster than the
        # pallas_call fixed overhead at this size.
        return _combine_ref(total_out, pad_visual_out, pad_audio_out)

    return _combine_pallas(total_out, pad_visual_out, pad_audio_out,
                           block_rows=block_rows)


if __name__ == "__main__":
    key = jax.random.PRNGKey(0)

    def rand3(k, shape, dtype=jnp.float32):
        k1, k2, k3 = jax.random.split(k, 3)
        return (jax.random.normal(k1, shape, dtype=dtype),
                jax.random.normal(k2, shape, dtype=dtype),
                jax.random.normal(k3, shape, dtype=dtype))

    # ---- Case 1: real workload size — [batch=2, num_classes=32] logits -------
    t, v, a = rand3(key, (2, 32))
    ref_a, ref_v = _combine_ref(t, v, a)

    # Forced Pallas path: odd shape -> single full-array block (no padding).
    m_a, m_v = grad_mod_2_modality_outputs(t, v, a, force_pallas=True)
    m_a, m_v = jax.block_until_ready((m_a, m_v))
    assert m_a.shape == ref_a.shape and m_a.dtype == ref_a.dtype
    assert jnp.allclose(m_a, ref_a, atol=1e-6, rtol=1e-6)
    assert jnp.allclose(m_v, ref_v, atol=1e-6, rtol=1e-6)

    # Auto dispatch (small -> fused XLA path).
    d_a, d_v = grad_mod_2_modality_outputs(t, v, a)
    d_a, d_v = jax.block_until_ready((d_a, d_v))
    assert jnp.allclose(d_a, ref_a, atol=1e-6, rtol=1e-6)
    assert jnp.allclose(d_v, ref_v, atol=1e-6, rtol=1e-6)

    # ---- Case 2: lane-dense tiled path, incl. a masked partial last block ----
    t2, v2, a2 = rand3(jax.random.PRNGKey(1), (200, 512))
    r_a, r_v = _combine_ref(t2, v2, a2)

    # Forced small blocks -> grid of 4 steps, last block is a partial (masked).
    g_a, g_v = grad_mod_2_modality_outputs(t2, v2, a2, force_pallas=True,
                                           block_rows=64)
    g_a, g_v = jax.block_until_ready((g_a, g_v))
    assert jnp.allclose(g_a, r_a, atol=1e-6, rtol=1e-6)
    assert jnp.allclose(g_v, r_v, atol=1e-6, rtol=1e-6)

    # Auto block sizing (>= 2 grid steps for megacore sharding).
    h_a, h_v = grad_mod_2_modality_outputs(t2, v2, a2, force_pallas=True)
    h_a, h_v = jax.block_until_ready((h_a, h_v))
    assert jnp.allclose(h_a, r_a, atol=1e-6, rtol=1e-6)
    assert jnp.allclose(h_v, r_v, atol=1e-6, rtol=1e-6)

    # ---- Case 3: odd last dim but flat size divisible by 128 (free refactor) -
    t3, v3, a3 = rand3(jax.random.PRNGKey(2), (6, 64))
    p_a, p_v = grad_mod_2_modality_outputs(t3, v3, a3, force_pallas=True)
    p_a, p_v = jax.block_until_ready((p_a, p_v))
    q_a, q_v = _combine_ref(t3, v3, a3)
    assert jnp.allclose(p_a, q_a, atol=1e-6, rtol=1e-6)
    assert jnp.allclose(p_v, q_v, atol=1e-6, rtol=1e-6)

    print("KERNEL_OK")
</pallas_src>

<mosaic_0001>
module attributes {stable_mosaic.version = 11 : i64} {
  func.func @_grad_mod_2_kernel(%arg0: i32, %arg1: memref<2x32xf32, #tpu.memory_space<vmem>>, %arg2: memref<2x32xf32, #tpu.memory_space<vmem>>, %arg3: memref<2x32xf32, #tpu.memory_space<vmem>>, %arg4: memref<2x32xf32, #tpu.memory_space<vmem>>, %arg5: memref<2x32xf32, #tpu.memory_space<vmem>>) attributes {dimension_semantics = [#tpu.dimension_semantics<parallel>], iteration_bounds = array<i64: 1>, scalar_prefetch = 0 : i64, scratch_operands = 0 : i64, tpu.core_type = #tpu.core_type<tc>, window_params = [{transform_indices = @transform_0, window_bounds = array<i64: 2, 32>}, {transform_indices = @transform_1, window_bounds = array<i64: 2, 32>}, {transform_indices = @transform_2, window_bounds = array<i64: 2, 32>}, {transform_indices = @transform_3, window_bounds = array<i64: 2, 32>}, {transform_indices = @transform_4, window_bounds = array<i64: 2, 32>}]} {
    %c0 = arith.constant 0 : index
    %c0_0 = arith.constant 0 : index
    %0 = vector.load %arg1[%c0, %c0_0] : memref<2x32xf32, #tpu.memory_space<vmem>>, vector<2x32xf32>
    %cst = arith.constant 5.000000e-01 : f32
    %1 = vector.broadcast %cst : f32 to vector<2x32xf32>
    %2 = arith.mulf %1, %0 : vector<2x32xf32>
    %c0_1 = arith.constant 0 : index
    %c0_2 = arith.constant 0 : index
    %3 = vector.load %arg2[%c0_1, %c0_2] : memref<2x32xf32, #tpu.memory_space<vmem>>, vector<2x32xf32>
    %c0_3 = arith.constant 0 : index
    %c0_4 = arith.constant 0 : index
    %4 = vector.load %arg3[%c0_3, %c0_4] : memref<2x32xf32, #tpu.memory_space<vmem>>, vector<2x32xf32>
    %5 = arith.subf %3, %4 : vector<2x32xf32>
    %cst_5 = arith.constant 5.000000e-01 : f32
    %6 = vector.broadcast %cst_5 : f32 to vector<2x32xf32>
    %7 = arith.mulf %6, %5 : vector<2x32xf32>
    %8 = arith.addf %2, %7 : vector<2x32xf32>
    %c0_6 = arith.constant 0 : index
    %c0_7 = arith.constant 0 : index
    %9 = vector.load %arg4[%c0_6, %c0_7] : memref<2x32xf32, #tpu.memory_space<vmem>>, vector<2x32xf32>
    tpu.vector_store %arg4[%c0_6, %c0_7], %8 {strides = array<i32>} : memref<2x32xf32, #tpu.memory_space<vmem>>, vector<2x32xf32>,
    %10 = arith.subf %2, %7 : vector<2x32xf32>
    %c0_8 = arith.constant 0 : index
    %c0_9 = arith.constant 0 : index
    %11 = vector.load %arg5[%c0_8, %c0_9] : memref<2x32xf32, #tpu.memory_space<vmem>>, vector<2x32xf32>
    tpu.vector_store %arg5[%c0_8, %c0_9], %10 {strides = array<i32>} : memref<2x32xf32, #tpu.memory_space<vmem>>, vector<2x32xf32>,
    return
  }
  func.func @transform_0(%arg0: i32) -> (i32, i32) {
    %c0_i32 = arith.constant 0 : i32
    %c0_i32_0 = arith.constant 0 : i32
    return %arg0, %c0_i32 : i32, i32
  }
  func.func @transform_1(%arg0: i32) -> (i32, i32) {
    %c0_i32 = arith.constant 0 : i32
    %c0_i32_0 = arith.constant 0 : i32
    return %arg0, %c0_i32 : i32, i32
  }
  func.func @transform_2(%arg0: i32) -> (i32, i32) {
    %c0_i32 = arith.constant 0 : i32
    %c0_i32_0 = arith.constant 0 : i32
    return %arg0, %c0_i32 : i32, i32
  }
  func.func @transform_3(%arg0: i32) -> (i32, i32) {
    %c0_i32 = arith.constant 0 : i32
    %c0_i32_0 = arith.constant 0 : i32
    return %arg0, %c0_i32 : i32, i32
  }
  func.func @transform_4(%arg0: i32) -> (i32, i32) {
    %c0_i32 = arith.constant 0 : i32
    %c0_i32_0 = arith.constant 0 : i32
    return %arg0, %c0_i32 : i32, i32
  }
}

</mosaic_0001>

<bundles_post_ra>
// kernel: tpu_custom_call.1
= control target key start
LH: loop header
LB: loop body
LE: loop exit
PB: predicated region body
PF: predicated region fallthrough
CT: control target
= control target key end

     0   :  { %10 = vsyncpa [#allocation3], 0  ;;  %s282_s0 = inlined_call_operand.hbm [shape: f32[2,32], index: 0, kind: input, shape index: {}]   ;;  %s283_s1 = inlined_call_operand.hbm [shape: f32[2,32], index: 1, kind: input, shape index: {}]   ;;  %s284_s2 = inlined_call_operand.hbm [shape: f32[2,32], index: 2, kind: input, shape index: {}]   ;;  %s285_s3 = inlined_call_operand.hbm [shape: f32[2,32], index: 3, kind: output, shape index: {0}]   ;;  %s286_s4 = inlined_call_operand.hbm [shape: f32[2,32], index: 4, kind: output, shape index: {1}]  }
   0x1   :  { %11 = vsyncpa [#allocation6], 0 }
   0x2   :  { %12 = vsyncpa [#allocation4], 0  ;;  %s30_s17 = sshll.u32 %s283_s1, 4  ;;  %s31_s17 = int_to_ptr.hbm [resolvable:$true] %s30_s17 }
   0x3   :  { %13 = vsyncpa [#allocation10], 0  ;;  %s237_s18 = smov [#allocation5]   ;;  %s19_s22 = sshll.u32 %s282_s0, 4  ;;  %s20_s22 = int_to_ptr.hbm [resolvable:$true] %s19_s22 }
   0x4   :  { %s32_s19 = sshll.u32 %s237_s18, 4  ;;  %s238_s23 = smov [#allocation2]   ;;  %s33_s19 = int_to_ptr.vmem [resolvable:$true] %s32_s19 }
   0x5   :  { %35 = dma.hbm_to_vmem [thread:$0]  %s31_s17, 32, %s33_s19, [#allocation6]  }
   0x6   :  { %s21_s24 = sshll.u32 %s238_s23, 4  ;;  %s41_s27 = sshll.u32 %s284_s2, 4  ;;  %s22_s24 = int_to_ptr.vmem [resolvable:$true] %s21_s24  ;;  %s42_s27 = int_to_ptr.hbm [resolvable:$true] %s41_s27 }
   0x7   :  { %24 = dma.hbm_to_vmem [thread:$0]  %s20_s22, 32, %s22_s24, [#allocation3]  }
   0x8   :  { %s239_s1 = smov [#allocation7]  }
   0x9   :  { %s43_s28 = sshll.u32 %s239_s1, 4  ;;  %s44_s28 = int_to_ptr.vmem [resolvable:$true] %s43_s28 }
   0xa   :  { %46 = dma.hbm_to_vmem [thread:$0]  %s42_s27, 32, %s44_s28, [#allocation6]  }
   0xb   :  { %229 = dma.done.wait [#allocation3], 32  }
   0xc   :  { %230 = vsyncadd [#allocation3], 4294967264 }
   0xd   :  { %231 = dma.done.wait [#allocation6], 64  }
   0xe   :  { %232 = vsyncadd [#allocation6], 4294967232  ;;  %v59_v0 = vld [vmem:[#allocation2] sm:$0x3]  ;;  %v61_v1 = vld [vmem:[#allocation5] sm:$0x3] }
   0xf   :  { %v62_v2 = vld [vmem:[#allocation7] sm:$0x3]  ;;  %v60_v3 = vmul.f32 0.5, %v59_v0  ;;  %s240_s0 = smov [#allocation8]   ;;  %s77_s5 = sshll.u32 %s285_s3, 4  ;;  %vm66_vm0 = vcmask 254976   ;;  %s78_s5 = int_to_ptr.hbm [resolvable:$true] %s77_s5 }
  0x10   :  { %v63_v4 = vsub.f32 %v61_v1, %v62_v2  ;;  %s75_s29 = sshll.u32 %s240_s0, 4  ;;  %s241_s6 = smov [#allocation9]   ;;  %s76_s29 = int_to_ptr.vmem [resolvable:$true] %s75_s29 }
  0x11   :  { %s86_s7 = sshll.u32 %s241_s6, 4  ;;  %s88_s10 = sshll.u32 %s286_s4, 4  ;;  %s87_s7 = int_to_ptr.vmem [resolvable:$true] %s86_s7  ;;  %s89_s10 = int_to_ptr.hbm [resolvable:$true] %s88_s10 }
  0x12   :  { %v64_v5 = vmul.f32 0.5, %v63_v4 }
  0x14   :  { %v65_v6 = vadd.f32 %v64_v5, %v60_v3  ;;  %v68_v7 = vsub.f32 %v60_v3, %v64_v5 }
  0x16   :  { %67 = vst.msk [vmem:[#allocation8] sm:$0x3] %vm66_vm0, %v65_v6 }
  0x17   :  { %69 = vst.msk [vmem:[#allocation9] sm:$0x3] %vm66_vm0, %v68_v7  ;;  %80 = dma.vmem_to_hbm [thread:$0]  %s76_s29, 32, %s78_s5, [#allocation4]  }
  0x18   :  { %91 = dma.vmem_to_hbm [thread:$0]  %s87_s7, 32, %s89_s10, [#allocation10]  }
  0x19   :  { %233 = dma.done.wait [#allocation4], 32  }
  0x1a   :  { %234 = vsyncadd [#allocation4], 4294967264 }
  0x1b   :  { %235 = dma.done.wait [#allocation10], 32  }
  0x1c   :  { %236 = vsyncadd [#allocation10], 4294967264 }
  0x1d   :  { %100 = vsyncpa [#allocation3], 1 }
  0x1e   :  { %101 = vsyncpa [#allocation6], 1 }
  0x1f   :  { %102 = vsyncpa [#allocation4], 1 }
  0x20   :  { %103 = vsyncpa [#allocation10], 1 }

</bundles_post_ra>
